<compile_context>
chip_gen: v7x
topology: tpu7x:2x2x1
jax: 0.10.0
libtpu: 0.0.40
codegen_flags: <defaults>
</compile_context>

<pallas_src>
import math

import jax
import jax.numpy as jnp
import numpy as np
from jax.experimental import pallas as pl
from jax.experimental.pallas import tpu as pltpu


def _uni_idx(i, j, n):
    # torch ModuleList build order: for in_size (target i), out_size j loops
    # over all j != i.  Matches the hard-coded indices in Nas().
    return (n - 1) * i + (j if j < i else j - 1)


def _gelu(x):
    """erf-based GELU (torch.nn.GELU default).  erf via Abramowitz–Stegun
    7.1.26 (|err| < 1.5e-7); only exp / reciprocal / arithmetic so it lowers
    cleanly in Mosaic and the transcendentals land on the EUP slot."""
    z = x * (1.0 / math.sqrt(2.0))
    a = jnp.abs(z)
    t = pl.reciprocal(1.0 + 0.3275911 * a, approx=True)
    poly = t * (0.254829592 + t * (-0.284496736 + t * (1.421413741
             + t * (-1.453152027 + t * 1.061405429))))
    erf_abs = 1.0 - poly * jnp.exp(-a * a)
    erf = jnp.where(z >= 0.0, erf_abs, -erf_abs)
    return 0.5 * x * (1.0 + erf)


# ---------------------------------------------------------------------------
# The fused kernel: decomp (all scales) + NAS mixing (season & trend) +
# residual out_cross, for the whole batch, in one invocation.
# ---------------------------------------------------------------------------
def _pdm_kernel(x_ref, avg_ref, w1_ref, b1_ref, w2_ref, b2_ref,
                ow1_ref, ob1_ref, ow2_ref, ob2_ref, out_ref):
    f32 = jnp.float32
    x = x_ref[...].astype(f32)                                  # (SumT, B*C)

    # series_decomp of every scale in one matmul: block-diagonal replicate-pad
    # moving-average operator.
    trend = jnp.dot(avg_ref[...], x, preferred_element_type=f32)
    season = x - trend

    # Fuse season & trend branches along the lane axis.
    st = jnp.concatenate([season, trend], axis=1)               # (SumT, 2*B*C)

    # NAS multi-scale mixing for ALL target scales as two packed matmuls:
    #   h = gelu(W1_all @ st + b1),  m = W2_all @ h + b2 + st
    # (the "+ st" term is the identity j == i contribution).
    h = _gelu(jnp.dot(w1_ref[...], st, preferred_element_type=f32)
              + b1_ref[...])                                    # (Hrows, 2*B*C)
    m = (jnp.dot(w2_ref[...], h, preferred_element_type=f32)
         + b2_ref[...] + st)                                    # (SumT, 2*B*C)

    # Residual out_cross_layer for all scales / batches at once.  ow1_ref is
    # the batch-block-diagonal weight stacked twice on its rows, so the
    # season+trend lane halves are summed by the matmul itself (no lane slice).
    hc = _gelu(jnp.dot(m, ow1_ref[...], preferred_element_type=f32)
               + ob1_ref[...])                                  # (SumT, B*d_ff)
    y = (jnp.dot(hc, ow2_ref[...], preferred_element_type=f32)
         + ob2_ref[...])                                        # (SumT, B*C)

    out_ref[...] = (x + y).astype(out_ref.dtype)


# ---------------------------------------------------------------------------
# Forward wrapper: one pallas_call for the whole module.
# ---------------------------------------------------------------------------
def past_decomposable_mixing_forward(x_list, packed):
    Ts = packed["Ts"]
    B, _, C = x_list[0].shape
    sum_t = int(sum(Ts))
    dtype = x_list[0].dtype

    # Lane-dense stacking done in the wrapper (XLA layout plumbing, not
    # compute): (B, T_i, C) -> (T_i, B*C), then concat all scales on the time
    # (sublane) axis.
    slabs = [jnp.transpose(x, (1, 0, 2)).reshape(T, B * C)
             for x, T in zip(x_list, Ts)]
    x_all = jnp.concatenate(slabs, axis=0)                      # (SumT, B*C)

    vmem = pl.BlockSpec(memory_space=pltpu.MemorySpace.VMEM)
    out = pl.pallas_call(
        _pdm_kernel,
        out_shape=jax.ShapeDtypeStruct((sum_t, B * C), dtype),
        in_specs=[vmem] * 10,
        out_specs=vmem,
    )(x_all, packed["avg"], packed["w1"], packed["b1"], packed["w2"],
      packed["b2"], packed["ow1"], packed["ob1"], packed["ow2"], packed["ob2"])

    # Split back per scale.  (Reference forward's out[:, :length, :] slice is
    # a no-op at these shapes.)
    outs, o = [], 0
    for T in Ts:
        outs.append(jnp.transpose(out[o:o + T].reshape(T, B, C), (1, 0, 2)))
        o += T
    return outs


# ---------------------------------------------------------------------------
# Parameters: per-pair torch-style init, then packing into the kernel layout.
# ---------------------------------------------------------------------------
def init_params(key, seq_len, d_model, d_ff, moving_avg_k,
                num_scales=4, down_sampling_window=2):
    Ts = [seq_len // down_sampling_window ** i for i in range(num_scales)]
    n = num_scales
    uni = []
    k = key
    for i in range(n):                      # target scale (in_size  = Ts[i])
        for j in range(n):                  # source scale (out_size = Ts[j])
            if j == i:
                continue
            Ti, Tj = Ts[i], Ts[j]
            k, k1, k2, k3, k4 = jax.random.split(k, 5)
            bd1 = 1.0 / math.sqrt(Tj)       # fan_in of Linear(Tj, Ti)
            bd2 = 1.0 / math.sqrt(Ti)       # fan_in of Linear(Ti, Ti)
            uni.append((
                jax.random.uniform(k1, (Ti, Tj), jnp.float32, -bd1, bd1),
                jax.random.uniform(k2, (Ti, 1), jnp.float32, -bd1, bd1),
                jax.random.uniform(k3, (Ti, Ti), jnp.float32, -bd2, bd2),
                jax.random.uniform(k4, (Ti, 1), jnp.float32, -bd2, bd2)))

    k, k1, k2, k3, k4 = jax.random.split(k, 5)
    bo1 = 1.0 / math.sqrt(d_model)
    bo2 = 1.0 / math.sqrt(d_ff)
    out_cross = (
        jax.random.uniform(k1, (d_model, d_ff), jnp.float32, -bo1, bo1),
        jax.random.uniform(k2, (1, d_ff), jnp.float32, -bo1, bo1),
        jax.random.uniform(k3, (d_ff, d_model), jnp.float32, -bo2, bo2),
        jax.random.uniform(k4, (1, d_model), jnp.float32, -bo2, bo2))

    return {"uni_scale": uni, "out_cross": out_cross,
            "moving_avg": moving_avg_k, "Ts": tuple(Ts)}


def pack_params(params, batch_size):
    """Pack the per-pair torch-style parameters into the kernel operands."""
    Ts = list(params["Ts"])
    n = len(Ts)
    off = np.concatenate([[0], np.cumsum(Ts)]).astype(int)
    sum_t = int(off[-1])
    hrows = [(n - 1) * t for t in Ts]
    hoff = np.concatenate([[0], np.cumsum(hrows)]).astype(int)
    h_rows = int(hoff[-1])

    w1_all = np.zeros((h_rows, sum_t), np.float32)
    b1_all = np.zeros((h_rows, 1), np.float32)
    w2_all = np.zeros((sum_t, h_rows), np.float32)
    b2_all = np.zeros((sum_t, 1), np.float32)

    uni = params["uni_scale"]
    for i in range(n):
        Ti = Ts[i]
        blk = 0
        for j in range(n):
            if j == i:
                continue
            w1, b1, w2, b2 = [np.asarray(a) for a in uni[_uni_idx(i, j, n)]]
            r0 = int(hoff[i]) + blk * Ti
            w1_all[r0:r0 + Ti, off[j]:off[j] + Ts[j]] = w1
            b1_all[r0:r0 + Ti, :] = b1
            w2_all[off[i]:off[i] + Ti, r0:r0 + Ti] = w2
            b2_all[off[i]:off[i] + Ti, :] += b2
            blk += 1

    # Block-diagonal replicate-pad moving-average operator, all scales at once.
    kk = int(params["moving_avg"])
    half = (kk - 1) // 2
    avg = np.zeros((sum_t, sum_t), np.float32)
    for s, T in enumerate(Ts):
        o = int(off[s])
        for t in range(T):
            for d in range(kk):
                src = min(max(t - half + d, 0), T - 1)
                avg[o + t, o + src] += 1.0 / kk

    # out_cross_layer: block-diagonal over the batch (lane = b*C + c), with the
    # first weight row-stacked twice so the season+trend lane halves are summed
    # inside the matmul.
    ow1, ob1, ow2, ob2 = [np.asarray(a) for a in params["out_cross"]]
    eye_b = np.eye(batch_size, dtype=np.float32)
    ow1_bd = np.kron(eye_b, ow1)                       # (B*C,   B*d_ff)
    ow2_bd = np.kron(eye_b, ow2)                       # (B*d_ff, B*C)
    ow1_sum = np.concatenate([ow1_bd, ow1_bd], axis=0)  # (2*B*C, B*d_ff)
    ob1_bd = np.tile(ob1, (1, batch_size))              # (1, B*d_ff)
    ob2_bd = np.tile(ob2, (1, batch_size))              # (1, B*C)

    return {
        "Ts": tuple(Ts),
        "avg": jnp.asarray(avg),
        "w1": jnp.asarray(w1_all), "b1": jnp.asarray(b1_all),
        "w2": jnp.asarray(w2_all), "b2": jnp.asarray(b2_all),
        "ow1": jnp.asarray(ow1_sum), "ob1": jnp.asarray(ob1_bd),
        "ow2": jnp.asarray(ow2_bd), "ob2": jnp.asarray(ob2_bd),
    }


# ---------------------------------------------------------------------------
# Pure-JAX reference (follows the torch forward literally) for a self-check.
# ---------------------------------------------------------------------------
def _reference_forward(x_list, params):
    n = len(x_list)
    kk = params["moving_avg"]
    half = (kk - 1) // 2
    uni = params["uni_scale"]
    ow1, ob1, ow2, ob2 = params["out_cross"]

    seasons, trends = [], []
    for x in x_list:
        T = x.shape[1]
        front = jnp.repeat(x[:, :1, :], half, axis=1)
        end = jnp.repeat(x[:, -1:, :], half, axis=1)
        xpad = jnp.concatenate([front, x, end], axis=1)
        trend = sum(xpad[:, d:d + T, :] for d in range(kk)) / kk
        seasons.append(x - trend)
        trends.append(trend)

    def nas_mix(sig, i):
        acc = sig[i]           # Nas_mix_cells modeled as identity (Mode.NONE)
        for j in range(n):
            if j == i:
                continue
            w1, b1, w2, b2 = uni[_uni_idx(i, j, n)]
            h = jax.nn.gelu(jnp.einsum("ab,nbc->nac", w1, sig[j]) + b1,
                            approximate=False)
            acc = acc + jnp.einsum("ab,nbc->nac", w2, h) + b2
        return acc

    outs = []
    for i in range(n):
        mix = nas_mix(seasons, i) + nas_mix(trends, i)
        h = jax.nn.gelu(mix @ ow1 + ob1, approximate=False)
        outs.append(x_list[i] + (h @ ow2 + ob2))
    return outs


if __name__ == "__main__":
    key = jax.random.PRNGKey(0)
    B, seq_len, d_model, d_ff = 2, 16, 16, 32
    moving_avg_k = 5
    num_scales = 4                           # T_i = seq_len // 2**i, i = 0..3
    down_sampling_window = 2
    Ts = [seq_len // down_sampling_window ** i for i in range(num_scales)]

    key, pkey = jax.random.split(key)
    params = init_params(pkey, seq_len, d_model, d_ff, moving_avg_k,
                         num_scales, down_sampling_window)
    packed = pack_params(params, B)

    x_list = []
    for T in Ts:
        key, xk = jax.random.split(key)
        x_list.append(jax.random.normal(xk, (B, T, d_model), jnp.float32))

    out_list = past_decomposable_mixing_forward(x_list, packed)
    out_list = jax.block_until_ready(out_list)

    # Numerical self-check against a plain-JAX reference (loose tolerance:
    # covers MXU-vs-XLA matmul precision and the erf-polynomial / approx-recip
    # GELU).
    with jax.default_matmul_precision("highest"):
        ref_list = _reference_forward(x_list, params)
    for o, r, T in zip(out_list, ref_list, Ts):
        assert o.shape == (B, T, d_model), o.shape
        assert o.dtype == jnp.float32
        err = float(jnp.max(jnp.abs(o - r)))
        assert err < 2e-2, f"mismatch vs reference at T={T}: max_abs_err={err}"

    print("KERNEL_OK")
</pallas_src>

<mosaic_0001>
module attributes {stable_mosaic.version = 11 : i64} {
  func.func @_pdm_kernel(%arg0: memref<30x32xf32, #tpu.memory_space<vmem>>, %arg1: memref<30x30xf32, #tpu.memory_space<vmem>>, %arg2: memref<90x30xf32, #tpu.memory_space<vmem>>, %arg3: memref<90x1xf32, #tpu.memory_space<vmem>>, %arg4: memref<30x90xf32, #tpu.memory_space<vmem>>, %arg5: memref<30x1xf32, #tpu.memory_space<vmem>>, %arg6: memref<64x64xf32, #tpu.memory_space<vmem>>, %arg7: memref<1x64xf32, #tpu.memory_space<vmem>>, %arg8: memref<64x32xf32, #tpu.memory_space<vmem>>, %arg9: memref<1x32xf32, #tpu.memory_space<vmem>>, %arg10: memref<30x32xf32, #tpu.memory_space<vmem>>) attributes {dimension_semantics = [], scalar_prefetch = 0 : i64, scratch_operands = 0 : i64, tpu.core_type = #tpu.core_type<tc>} {
    %c0 = arith.constant 0 : index
    %c0_0 = arith.constant 0 : index
    %0 = vector.load %arg0[%c0, %c0_0] : memref<30x32xf32, #tpu.memory_space<vmem>>, vector<30x32xf32>
    %c0_1 = arith.constant 0 : index
    %c0_2 = arith.constant 0 : index
    %1 = vector.load %arg1[%c0_1, %c0_2] : memref<30x30xf32, #tpu.memory_space<vmem>>, vector<30x30xf32>
    %cst = arith.constant dense<0.000000e+00> : vector<30x32xf32>
    %2 = tpu.matmul %1, %0, %cst {dimension_numbers = #tpu.dot_dimension_numbers<[1], [0], [0], [1], [0, 0, 1, 1], [], []>} : vector<30x30xf32>, vector<30x32xf32>, vector<30x32xf32> -> vector<30x32xf32>
    %3 = arith.subf %0, %2 : vector<30x32xf32>
    %4 = tpu.concatenate %3, %2 in 1 : vector<30x32xf32>, vector<30x32xf32> -> vector<30x64xf32>
    %c0_3 = arith.constant 0 : index
    %c0_4 = arith.constant 0 : index
    %5 = vector.load %arg2[%c0_3, %c0_4] : memref<90x30xf32, #tpu.memory_space<vmem>>, vector<90x30xf32>
    %cst_5 = arith.constant dense<0.000000e+00> : vector<90x64xf32>
    %6 = tpu.matmul %5, %4, %cst_5 {dimension_numbers = #tpu.dot_dimension_numbers<[1], [0], [0], [1], [0, 0, 1, 1], [], []>} : vector<90x30xf32>, vector<30x64xf32>, vector<90x64xf32> -> vector<90x64xf32>
    %c0_6 = arith.constant 0 : index
    %c0_7 = arith.constant 0 : index
    %7 = vector.load %arg3[%c0_6, %c0_7] : memref<90x1xf32, #tpu.memory_space<vmem>>, vector<90x1xf32>
    %8 = vector.broadcast %7 : vector<90x1xf32> to vector<90x64xf32>
    %9 = arith.addf %6, %8 : vector<90x64xf32>
    %cst_8 = arith.constant 0.707106769 : f32
    %10 = vector.broadcast %cst_8 : f32 to vector<90x64xf32>
    %11 = arith.mulf %9, %10 : vector<90x64xf32>
    %12 = math.absf %11 : vector<90x64xf32>
    %cst_9 = arith.constant 0.327591091 : f32
    %13 = vector.broadcast %cst_9 : f32 to vector<90x64xf32>
    %14 = arith.mulf %13, %12 : vector<90x64xf32>
    %cst_10 = arith.constant 1.000000e+00 : f32
    %15 = vector.broadcast %cst_10 : f32 to vector<90x64xf32>
    %16 = arith.addf %15, %14 : vector<90x64xf32>
    %17 = tpu.reciprocal %16 {approx = true} : vector<90x64xf32> -> vector<90x64xf32>
    %cst_11 = arith.constant 1.06140542 : f32
    %18 = vector.broadcast %cst_11 : f32 to vector<90x64xf32>
    %19 = arith.mulf %17, %18 : vector<90x64xf32>
    %cst_12 = arith.constant -1.45315206 : f32
    %20 = vector.broadcast %cst_12 : f32 to vector<90x64xf32>
    %21 = arith.addf %20, %19 : vector<90x64xf32>
    %22 = arith.mulf %17, %21 : vector<90x64xf32>
    %cst_13 = arith.constant 1.42141378 : f32
    %23 = vector.broadcast %cst_13 : f32 to vector<90x64xf32>
    %24 = arith.addf %23, %22 : vector<90x64xf32>
    %25 = arith.mulf %17, %24 : vector<90x64xf32>
    %cst_14 = arith.constant -0.284496725 : f32
    %26 = vector.broadcast %cst_14 : f32 to vector<90x64xf32>
    %27 = arith.addf %26, %25 : vector<90x64xf32>
    %28 = arith.mulf %17, %27 : vector<90x64xf32>
    %cst_15 = arith.constant 0.254829586 : f32
    %29 = vector.broadcast %cst_15 : f32 to vector<90x64xf32>
    %30 = arith.addf %29, %28 : vector<90x64xf32>
    %31 = arith.mulf %17, %30 : vector<90x64xf32>
    %cst_16 = arith.constant 0.000000e+00 : f32
    %32 = vector.broadcast %cst_16 : f32 to vector<90x64xf32>
    %33 = arith.subf %32, %12 : vector<90x64xf32>
    %34 = arith.mulf %33, %12 : vector<90x64xf32>
    %35 = math.exp %34 : vector<90x64xf32>
    %36 = arith.mulf %31, %35 : vector<90x64xf32>
    %cst_17 = arith.constant 1.000000e+00 : f32
    %37 = vector.broadcast %cst_17 : f32 to vector<90x64xf32>
    %38 = arith.subf %37, %36 : vector<90x64xf32>
    %cst_18 = arith.constant 0.000000e+00 : f32
    %39 = vector.broadcast %cst_18 : f32 to vector<90x64xf32>
    %40 = arith.cmpf oge, %11, %39 : vector<90x64xf32>
    %cst_19 = arith.constant 0.000000e+00 : f32
    %41 = vector.broadcast %cst_19 : f32 to vector<90x64xf32>
    %42 = arith.subf %41, %38 : vector<90x64xf32>
    %43 = arith.select %40, %38, %42 : vector<90x64xi1>, vector<90x64xf32>
    %cst_20 = arith.constant 5.000000e-01 : f32
    %44 = vector.broadcast %cst_20 : f32 to vector<90x64xf32>
    %45 = arith.mulf %44, %9 : vector<90x64xf32>
    %cst_21 = arith.constant 1.000000e+00 : f32
    %46 = vector.broadcast %cst_21 : f32 to vector<90x64xf32>
    %47 = arith.addf %46, %43 : vector<90x64xf32>
    %48 = arith.mulf %45, %47 : vector<90x64xf32>
    %c0_22 = arith.constant 0 : index
    %c0_23 = arith.constant 0 : index
    %49 = vector.load %arg4[%c0_22, %c0_23] : memref<30x90xf32, #tpu.memory_space<vmem>>, vector<30x90xf32>
    %cst_24 = arith.constant dense<0.000000e+00> : vector<30x64xf32>
    %50 = tpu.matmul %49, %48, %cst_24 {dimension_numbers = #tpu.dot_dimension_numbers<[1], [0], [0], [1], [0, 0, 1, 1], [], []>} : vector<30x90xf32>, vector<90x64xf32>, vector<30x64xf32> -> vector<30x64xf32>
    %c0_25 = arith.constant 0 : index
    %c0_26 = arith.constant 0 : index
    %51 = vector.load %arg5[%c0_25, %c0_26] : memref<30x1xf32, #tpu.memory_space<vmem>>, vector<30x1xf32>
    %52 = vector.broadcast %51 : vector<30x1xf32> to vector<30x64xf32>
    %53 = arith.addf %50, %52 : vector<30x64xf32>
    %54 = arith.addf %53, %4 : vector<30x64xf32>
    %c0_27 = arith.constant 0 : index
    %c0_28 = arith.constant 0 : index
    %55 = vector.load %arg6[%c0_27, %c0_28] : memref<64x64xf32, #tpu.memory_space<vmem>>, vector<64x64xf32>
    %cst_29 = arith.constant dense<0.000000e+00> : vector<30x64xf32>
    %56 = tpu.matmul %54, %55, %cst_29 {dimension_numbers = #tpu.dot_dimension_numbers<[1], [0], [0], [1], [0, 0, 1, 1], [], []>} : vector<30x64xf32>, vector<64x64xf32>, vector<30x64xf32> -> vector<30x64xf32>
    %c0_30 = arith.constant 0 : index
    %c0_31 = arith.constant 0 : index
    %57 = vector.load %arg7[%c0_30, %c0_31] : memref<1x64xf32, #tpu.memory_space<vmem>>, vector<1x64xf32>
    %58 = vector.broadcast %57 : vector<1x64xf32> to vector<30x64xf32>
    %59 = arith.addf %56, %58 : vector<30x64xf32>
    %cst_32 = arith.constant 0.707106769 : f32
    %60 = vector.broadcast %cst_32 : f32 to vector<30x64xf32>
    %61 = arith.mulf %59, %60 : vector<30x64xf32>
    %62 = math.absf %61 : vector<30x64xf32>
    %cst_33 = arith.constant 0.327591091 : f32
    %63 = vector.broadcast %cst_33 : f32 to vector<30x64xf32>
    %64 = arith.mulf %63, %62 : vector<30x64xf32>
    %cst_34 = arith.constant 1.000000e+00 : f32
    %65 = vector.broadcast %cst_34 : f32 to vector<30x64xf32>
    %66 = arith.addf %65, %64 : vector<30x64xf32>
    %67 = tpu.reciprocal %66 {approx = true} : vector<30x64xf32> -> vector<30x64xf32>
    %cst_35 = arith.constant 1.06140542 : f32
    %68 = vector.broadcast %cst_35 : f32 to vector<30x64xf32>
    %69 = arith.mulf %67, %68 : vector<30x64xf32>
    %cst_36 = arith.constant -1.45315206 : f32
    %70 = vector.broadcast %cst_36 : f32 to vector<30x64xf32>
    %71 = arith.addf %70, %69 : vector<30x64xf32>
    %72 = arith.mulf %67, %71 : vector<30x64xf32>
    %cst_37 = arith.constant 1.42141378 : f32
    %73 = vector.broadcast %cst_37 : f32 to vector<30x64xf32>
    %74 = arith.addf %73, %72 : vector<30x64xf32>
    %75 = arith.mulf %67, %74 : vector<30x64xf32>
    %cst_38 = arith.constant -0.284496725 : f32
    %76 = vector.broadcast %cst_38 : f32 to vector<30x64xf32>
    %77 = arith.addf %76, %75 : vector<30x64xf32>
    %78 = arith.mulf %67, %77 : vector<30x64xf32>
    %cst_39 = arith.constant 0.254829586 : f32
    %79 = vector.broadcast %cst_39 : f32 to vector<30x64xf32>
    %80 = arith.addf %79, %78 : vector<30x64xf32>
    %81 = arith.mulf %67, %80 : vector<30x64xf32>
    %cst_40 = arith.constant 0.000000e+00 : f32
    %82 = vector.broadcast %cst_40 : f32 to vector<30x64xf32>
    %83 = arith.subf %82, %62 : vector<30x64xf32>
    %84 = arith.mulf %83, %62 : vector<30x64xf32>
    %85 = math.exp %84 : vector<30x64xf32>
    %86 = arith.mulf %81, %85 : vector<30x64xf32>
    %cst_41 = arith.constant 1.000000e+00 : f32
    %87 = vector.broadcast %cst_41 : f32 to vector<30x64xf32>
    %88 = arith.subf %87, %86 : vector<30x64xf32>
    %cst_42 = arith.constant 0.000000e+00 : f32
    %89 = vector.broadcast %cst_42 : f32 to vector<30x64xf32>
    %90 = arith.cmpf oge, %61, %89 : vector<30x64xf32>
    %cst_43 = arith.constant 0.000000e+00 : f32
    %91 = vector.broadcast %cst_43 : f32 to vector<30x64xf32>
    %92 = arith.subf %91, %88 : vector<30x64xf32>
    %93 = arith.select %90, %88, %92 : vector<30x64xi1>, vector<30x64xf32>
    %cst_44 = arith.constant 5.000000e-01 : f32
    %94 = vector.broadcast %cst_44 : f32 to vector<30x64xf32>
    %95 = arith.mulf %94, %59 : vector<30x64xf32>
    %cst_45 = arith.constant 1.000000e+00 : f32
    %96 = vector.broadcast %cst_45 : f32 to vector<30x64xf32>
    %97 = arith.addf %96, %93 : vector<30x64xf32>
    %98 = arith.mulf %95, %97 : vector<30x64xf32>
    %c0_46 = arith.constant 0 : index
    %c0_47 = arith.constant 0 : index
    %99 = vector.load %arg8[%c0_46, %c0_47] : memref<64x32xf32, #tpu.memory_space<vmem>>, vector<64x32xf32>
    %cst_48 = arith.constant dense<0.000000e+00> : vector<30x32xf32>
    %100 = tpu.matmul %98, %99, %cst_48 {dimension_numbers = #tpu.dot_dimension_numbers<[1], [0], [0], [1], [0, 0, 1, 1], [], []>} : vector<30x64xf32>, vector<64x32xf32>, vector<30x32xf32> -> vector<30x32xf32>
    %c0_49 = arith.constant 0 : index
    %c0_50 = arith.constant 0 : index
    %101 = vector.load %arg9[%c0_49, %c0_50] : memref<1x32xf32, #tpu.memory_space<vmem>>, vector<1x32xf32>
    %102 = vector.broadcast %101 : vector<1x32xf32> to vector<30x32xf32>
    %103 = arith.addf %100, %102 : vector<30x32xf32>
    %104 = arith.addf %0, %103 : vector<30x32xf32>
    %c0_51 = arith.constant 0 : index
    %c0_52 = arith.constant 0 : index
    %105 = vector.load %arg10[%c0_51, %c0_52] : memref<30x32xf32, #tpu.memory_space<vmem>>, vector<30x32xf32>
    tpu.vector_store %arg10[%c0_51, %c0_52], %104 {strides = array<i32>} : memref<30x32xf32, #tpu.memory_space<vmem>>, vector<30x32xf32>,
    return
  }
}

</mosaic_0001>

<bundles_post_ra>
// kernel: tpu_custom_call.1
= control target key start
LH: loop header
LB: loop body
LE: loop exit
PB: predicated region body
PF: predicated region fallthrough
CT: control target
= control target key end

     0   :  { %vm57_vm0 = vcmask 1045504   ;;  %vm44_vm1 = vcmask 244736   ;;  %vm1608_vm2 = vmmov 1   ;;  %s2205_s0 = inlined_call_operand.vmem [shape: f32[30,32], index: 0, kind: input, shape index: {}]   ;;  %s2206_s1 = inlined_call_operand.vmem [shape: f32[30,30], index: 1, kind: input, shape index: {}]   ;;  %s2207_s2 = inlined_call_operand.vmem [shape: f32[90,30], index: 2, kind: input, shape index: {}]   ;;  %s2208_s3 = inlined_call_operand.vmem [shape: f32[90,1], index: 3, kind: input, shape index: {}]   ;;  %s2209_s4 = inlined_call_operand.vmem [shape: f32[30,90], index: 4, kind: input, shape index: {}]   ;;  %s2210_s5 = inlined_call_operand.vmem [shape: f32[30,1], index: 5, kind: input, shape index: {}]   ;;  %s2211_s6 = inlined_call_operand.vmem [shape: f32[64,64], index: 6, kind: input, shape index: {}]   ;;  %s2212_s7 = inlined_call_operand.vmem [shape: f32[1,64], index: 7, kind: input, shape index: {}]   ;;  %s2213_s8 = inlined_call_operand.vmem [shape: f32[64,32], index: 8, kind: input, shape index: {}]   ;;  %s2214_s9 = inlined_call_operand.vmem [shape: f32[1,32], index: 9, kind: input, shape index: {}]   ;;  %s2215_s10 = inlined_call_operand.hbm [shape: f32[30,32], index: 10, kind: output, shape index: {}]  }
   0x1   :  { %v1672_v0 = vld [vmem:[%s2205_s0] sm:$0xff]  ;;  %v1677_v1 = vld [vmem:[%s2205_s0 + $0x8] sm:$0xff]  ;;  %v1682_v2 = vld [vmem:[%s2205_s0 + $0x10] sm:$0xff] }
   0x2   :  { %v1430_v3 = vpack.c.bf16 %v1677_v1, %v1672_v0  ;;  %v1689_v4 = vld [vmem:[%s2205_s0 + $0x18] sm:$0x3f]  ;;  %v40_v5 = vld [vmem:[%s2206_s1] sm:$0xff]  ;;  %vm1697_vm3 = vmpackc.low %vm57_vm0, %vm1608_vm2 }
   0x3   :  { %v1434_v6 = vpack.c.bf16 %v1689_v4, %v1682_v2  ;;  %1324 = vmatprep.mubr.msk.f32.mxu1 %vm44_vm1, %v40_v5 }
   0x4   :  { %1431 = vmatprep.subr.bf16.mxu1 %v1430_v3 }
   0x5   :  { %15 = vsyncpa [#allocation3], 0  ;;  %1433 = vmatpush3.bf16.msra.mxu1 %v1430_v3  ;;  %v41_v8 = vld [vmem:[%s2206_s1 + $0x8] sm:$0xff]  ;;  %v42_v9 = vld [vmem:[%s2206_s1 + $0x10] sm:$0xff]  ;;  %s1609_s11 = smov 32   ;;  %v1610_v18 = vmov 0  }
   0x6   :  { %1436 = vmatprep.subr.msk.bf16.mxu1 %vm1697_vm3, %v1434_v6  ;;  %v43_v10 = vld [vmem:[%s2206_s1 + $0x18] sm:$0x3f]  ;;  %v171_v13 = vld [vmem:[%s2207_s2] sm:$0xff]  ;;  %v184_v17 = vld [vmem:[%s2208_s3 + $0x8] sm:$0xff]  ;;  %1515 = vset.pattern.permute.xlu1 %v1610_v18  ;;  %vm166_vm4 = vcmask 261120   ;;  %vm759_vm5 = vcmask 736256  }
   0x7   :  { %v183_v16 = vld [vmem:[%s2208_s3] sm:$0xff]  ;;  %1514 = vset.pattern.permute.xlu0 %v1610_v18  ;;  %v186_v19 = vld [vmem:[%s2208_s3 + $0x18] sm:$0xff]  ;;  %v185_v20 = vld [vmem:[%s2208_s3 + $0x10] sm:$0xff] }
   0x8   :  { %v188_v21 = vld [vmem:[%s2208_s3 + $0x28] sm:$0xff]  ;;  %v187_v22 = vld [vmem:[%s2208_s3 + $0x20] sm:$0xff]  ;;  %v190_v23 = vld [vmem:[%s2208_s3 + $0x38] sm:$0xff] }
   0x9   :  { %1439 = vmatpush3.bf16.msk.msra.mxu1 %vm1697_vm3, %v1434_v6  ;;  %v189_v24 = vld [vmem:[%s2208_s3 + $0x30] sm:$0xff]  ;;  %v192_v25 = vld [vmem:[%s2208_s3 + $0x48] sm:$0xff]  ;;  %v191_v26 = vld [vmem:[%s2208_s3 + $0x40] sm:$0xff] }
   0xa   :  { %v194_v27 = vld [vmem:[%s2208_s3 + $0x58] sm:$0x3]  ;;  %v193_v28 = vld [vmem:[%s2208_s3 + $0x50] sm:$0xff]  ;;  %v736_v29 = vld [vmem:[%s2210_s5 + $0x8] sm:$0xff] }
   0xb   :  { %v735_v30 = vld [vmem:[%s2210_s5] sm:$0xff]  ;;  %v738_v31 = vld [vmem:[%s2210_s5 + $0x18] sm:$0x3f]  ;;  %v737_v32 = vld [vmem:[%s2210_s5 + $0x10] sm:$0xff] }
   0xc   :  { %1325 = vmatmul.mubr.msk.f32.vlgmr.msra.gmra.mrb[0].mxu1 %vm44_vm1, %v41_v8  ;;  %v172_v47 = vld [vmem:[%s2207_s2 + $0x8] sm:$0xff]  ;;  %v173_v48 = vld [vmem:[%s2207_s2 + $0x10] sm:$0xff]  ;;  %v174_v49 = vld [vmem:[%s2207_s2 + $0x18] sm:$0xff] }
   0xd   :  { %1327 = vmatprep.mubr.msk.f32.mxu1 %vm44_vm1, %v42_v9  ;;  %v175_v50 = vld [vmem:[%s2207_s2 + $0x20] sm:$0xff]  ;;  %v176_v51 = vld [vmem:[%s2207_s2 + $0x28] sm:$0xff]  ;;  %v177_v52 = vld [vmem:[%s2207_s2 + $0x30] sm:$0xff] }
   0xe   :  { %v178_v53 = vld [vmem:[%s2207_s2 + $0x38] sm:$0xff]  ;;  %v179_v54 = vld [vmem:[%s2207_s2 + $0x40] sm:$0xff]  ;;  %v180_v55 = vld [vmem:[%s2207_s2 + $0x48] sm:$0xff] }
   0xf   :  { %v181_v56 = vld [vmem:[%s2207_s2 + $0x50] sm:$0xff]  ;;  %v182_v57 = vld [vmem:[%s2207_s2 + $0x58] sm:$0x3]  ;;  %v731_v58 = vld [vmem:[%s2209_s4] sm:$0xff] }
  0x10   :  { %1328 = vmatmul.mubr.msk.f32.gmra.mrb[2].mxu1 %vm44_vm1, %v43_v10  ;;  %1380 = vmatprep.mubr.msk.f32.mxu0 %vm759_vm5, %v731_v58  ;;  %v865_v61 = vld [vmem:[%s2211_s6] sm:$0xff]  ;;  %v866_v62 = vld [vmem:[%s2211_s6 + $0x8] sm:$0xff]  ;;  %v867_v63 = vld [vmem:[%s2211_s6 + $0x10] sm:$0xff] }
  0x11   :  { %1338 = vmatprep.mubr.msk.f32.mxu1 %vm44_vm1, %v171_v13  ;;  %v869_v6 = vld [vmem:[%s2211_s6 + $0x20] sm:$0xff]  ;;  %v870_v7 = vld [vmem:[%s2211_s6 + $0x28] sm:$0xff] }
  0xdf   :  { %v1326_v11 = vpop.f32.mrb[0].mxu1 }
  0xe0   :  { %v127_v12 = vpop.f32.mrb[1].mxu1  ;;  %v147_v34 = vsub.f32 %v1677_v1, %v1326_v11  ;;  %v1476_v1 = vpack.c.bf16 %v866_v62, %v865_v61 }
  0xe1   :  { %154 = vrot.lane.b32.xlu0 %v127_v12, %s1609_s11  ;;  %v146_v35 = vsub.f32 %v1672_v0, %v127_v12 }
  0xe3   :  { %v1329_v14 = vpop.f32.mrb[2].mxu1 }
  0xe4   :  { %v137_v15 = vpop.f32.mrb[3].mxu1  ;;  %v149_v41 = vsub.f32 %v1689_v4, %v1329_v14 }
  0xe5   :  { %156 = vrot.lane.b32.xlu0 %v1326_v11, %s1609_s11  ;;  %158 = vrot.lane.b32.xlu1 %v137_v15, %s1609_s11  ;;  %v148_v42 = vsub.f32 %v1682_v2, %v137_v15  ;;  %v868_v2 = vld [vmem:[%s2211_s6 + $0x18] sm:$0xff]  ;;  %v1484_v11 = vpack.c.bf16 %v870_v7, %v869_v6 }
  0xe6   :  { %v1480_v5 = vpack.c.bf16 %v868_v2, %v867_v63 }
  0xe9   :  { %160 = vrot.lane.b32.xlu1 %v1329_v14, %s1609_s11  ;;  %197 = vperm.xlu0 %1514, %v183_v16  }
  0xed   :  { %202 = vperm.xlu1 %1515, %v184_v17   ;;  %212 = vperm.xlu0 %1514, %v186_v19  }
  0xf1   :  { %207 = vperm.xlu1 %1515, %v185_v20   ;;  %222 = vperm.xlu0 %1514, %v188_v21  }
  0xf5   :  { %217 = vperm.xlu1 %1515, %v187_v22   ;;  %232 = vperm.xlu0 %1514, %v190_v23  }
  0xf9   :  { %227 = vperm.xlu1 %1515, %v189_v24   ;;  %242 = vperm.xlu0 %1514, %v192_v25  }
  0xfd   :  { %237 = vperm.xlu1 %1515, %v191_v26   ;;  %252 = vperm.xlu0 %1514, %v194_v27  }
 0x101   :  { %247 = vperm.xlu1 %1515, %v193_v28   ;;  %746 = vperm.xlu0 %1514, %v736_v29  }
 0x105   :  { %741 = vperm.xlu1 %1515, %v735_v30   ;;  %756 = vperm.xlu0 %1514, %v738_v31  }
 0x109   :  { %751 = vperm.xlu1 %1515, %v737_v32  }
 0x153   :  { %v155_v33 = vpop.permute.xlu0 %154 }
 0x154   :  { %v1773_v38 = vsel %vm166_vm4, %v146_v35, %v155_v33 }
 0x157   :  { %v157_v36 = vpop.permute.xlu0 %156  ;;  %v159_v37 = vpop.permute.xlu1 %158 }
 0x158   :  { %v1776_v39 = vsel %vm166_vm4, %v147_v34, %v157_v36  ;;  %v1783_v44 = vsel %vm166_vm4, %v148_v42, %v159_v37 }
 0x159   :  { %v1440_v40 = vpack.c.bf16 %v1776_v39, %v1773_v38 }
 0x15b   :  { %1441 = vmatprep.subr.bf16.mxu1 %v1440_v40  ;;  %v161_v43 = vpop.permute.xlu1 %160 }
 0x15c   :  { %v1786_v45 = vsel %vm166_vm4, %v149_v41, %v161_v43  ;;  %1443 = vmatpush3.bf16.msra.mxu1 %v1440_v40 }
 0x15d   :  { %v1444_v46 = vpack.c.bf16 %v1786_v45, %v1783_v44 }
 0x15f   :  { %1446 = vmatprep.subr.msk.bf16.mxu1 %vm1697_vm3, %v1444_v46 }
 0x160   :  { %1449 = vmatpush3.bf16.msk.msra.mxu1 %vm1697_vm3, %v1444_v46  ;;  %vm772_vm3 = vcmask 1041408  }
 0x161   :  { %1477 = vmatprep.subr.bf16.mxu1 %v1476_v1 }
 0x163   :  { %1339 = vmatmul.mubr.msk.f32.vlgmr.msra.gmra.mrb[4].mxu1 %vm44_vm1, %v172_v47 }
 0x164   :  { %1341 = vmatprep.mubr.msk.f32.mxu1 %vm44_vm1, %v173_v48  ;;  %1479 = vmatpush3.bf16.msra.mxu1 %v1476_v1 }
 0x165   :  { %1481 = vmatprep.subr.bf16.mxu1 %v1480_v5 }
 0x167   :  { %1342 = vmatmul.mubr.msk.f32.gmra.mrb[6].mxu1 %vm44_vm1, %v174_v49 }
 0x168   :  { %1344 = vmatprep.mubr.msk.f32.mxu1 %vm44_vm1, %v175_v50  ;;  %v198_v59 = vpop.permute.xlu0 %197  ;;  %1483 = vmatpush3.bf16.msra.mxu1 %v1480_v5 }
 0x169   :  { %1485 = vmatprep.subr.bf16.mxu1 %v1484_v11 }
 0x16b   :  { %1345 = vmatmul.mubr.msk.f32.gmra.mrb[8].mxu1 %vm44_vm1, %v176_v51 }
 0x16c   :  { %1347 = vmatprep.mubr.msk.f32.mxu1 %vm44_vm1, %v177_v52  ;;  %v203_v60 = vpop.permute.xlu1 %202  ;;  %v213_v9 = vpop.permute.xlu0 %212  ;;  %1487 = vmatpush3.bf16.msra.mxu1 %v1484_v11 }
 0x16f   :  { %1348 = vmatmul.mubr.msk.f32.gmra.mrb[10].mxu1 %vm44_vm1, %v178_v53 }
 0x170   :  { %1350 = vmatprep.mubr.msk.f32.mxu1 %vm44_vm1, %v179_v54  ;;  %v208_v12 = vpop.permute.xlu1 %207  ;;  %v223_v23 = vpop.permute.xlu0 %222 }
 0x173   :  { %1351 = vmatmul.mubr.msk.f32.gmra.mrb[12].mxu1 %vm44_vm1, %v180_v55 }
 0x174   :  { %1353 = vmatprep.mubr.msk.f32.mxu1 %vm44_vm1, %v181_v56  ;;  %v218_v27 = vpop.permute.xlu1 %217  ;;  %v233_v43 = vpop.permute.xlu0 %232 }
 0x177   :  { %1354 = vmatmul.mubr.msk.f32.gmra.mrb[14].mxu1 %vm44_vm1, %v182_v57 }
 0x178   :  { %v228_v48 = vpop.permute.xlu1 %227 }
 0x236   :  { %v1340_v0 = vpop.f32.mrb[4].mxu1 }
 0x237   :  { %v1854_v3 = vadd.f32 %v1340_v0, %v203_v60  ;;  %v360_v4 = vpop.f32.mrb[5].mxu1 }
 0x238   :  { %v1862_v8 = vadd.f32 %v360_v4, %v198_v59 }
 0x239   :  { %v1865_v13 = vmul.f32 0.70710677, %v1854_v3 }
 0x23a   :  { %v1343_v10 = vpop.f32.mrb[6].mxu1  ;;  %v1868_v16 = vmul.f32 0.70710677, %v1862_v8 }
 0x23b   :  { %v376_v14 = vadd.f32 %v1343_v10, %v213_v9  ;;  %v370_v15 = vpop.f32.mrb[7].mxu1  ;;  %v432_v20 = vand.u32 2147483647, %v1865_v13  ;;  %vm660_vm15 = vcmp.ge.f32.partialorder %v1865_v13, 0.0 }
 0x23c   :  { %v371_v17 = vadd.f32 %v370_v15, %v208_v12  ;;  %v431_v24 = vand.u32 2147483647, %v1868_v16  ;;  %vm659_vm14 = vcmp.ge.f32.partialorder %v1868_v16, 0.0 }
 0x23d   :  { %v1870_v18 = vmul.f32 0.70710677, %v376_v14  ;;  %v444_v31 = vmul.f32 0.3275911, %v432_v20  ;;  %v588_v40 = vsub.f32 0.0, %v432_v20  ;;  %v1885_v50 = vmul.f32 0.5, %v376_v14 }
 0x23e   :  { %v1872_v19 = vmul.f32 0.70710677, %v371_v17  ;;  %v1346_v22 = vpop.f32.mrb[8].mxu1  ;;  %v443_v35 = vmul.f32 0.3275911, %v431_v24  ;;  %v587_v41 = vsub.f32 0.0, %v431_v24 }
 0x23f   :  { %v434_v21 = vand.u32 2147483647, %v1870_v18  ;;  %v380_v26 = vpop.f32.mrb[9].mxu1  ;;  %v386_v33 = vadd.f32 %v1346_v22, %v223_v23  ;;  %v456_v49 = vadd.f32 1.0, %v444_v31  ;;  %v600_v58 = vmul.f32 %v588_v40, %v432_v20 }
 0x240   :  { %v433_v25 = vand.u32 2147483647, %v1872_v19  ;;  %v1878_v37 = vadd.f32 %v380_v26, %v218_v27  ;;  %v455_v54 = vadd.f32 1.0, %v443_v35  ;;  %v599_v59 = vmul.f32 %v587_v41, %v431_v24 }
 0x241   :  { %v446_v28 = vmul.f32 0.3275911, %v434_v21  ;;  %v1880_v42 = vmul.f32 0.70710677, %v386_v33  ;;  %v590_v55 = vsub.f32 0.0, %v434_v21  ;;  %v1896_v63 = vmul.f32 0.5, %v371_v17  ;;  %v243_v17 = vpop.permute.xlu0 %242 }
 0x242   :  { %v445_v29 = vmul.f32 0.3275911, %v433_v25  ;;  %v1349_v30 = vpop.f32.mrb[10].mxu1  ;;  %v1883_v46 = vmul.f32 0.70710677, %v1878_v37  ;;  %v589_v62 = vsub.f32 0.0, %v433_v25 }
 0x243   :  { %v458_v32 = vadd.f32 1.0, %v446_v28  ;;  %v390_v34 = vpop.f32.mrb[11].mxu1  ;;  %v436_v51 = vand.u32 2147483647, %v1880_v42  ;;  %v1888_v52 = vadd.f32 %v1349_v30, %v233_v43  ;;  %v602_v7 = vmul.f32 %v590_v55, %v434_v21 }
 0x244   :  { %v457_v36 = vadd.f32 1.0, %v445_v29  ;;  %v435_v56 = vand.u32 2147483647, %v1883_v46  ;;  %v1891_v57 = vadd.f32 %v390_v34, %v228_v48  ;;  %v1907_v12 = vmul.f32 1.442695, %v600_v58 }
 0x245   :  { %1516 = vrcp.f32 %v458_v32  ;;  %v448_v60 = vmul.f32 0.3275911, %v436_v51  ;;  %v1894_v61 = vmul.f32 0.70710677, %v1888_v52  ;;  %v592_v4 = vsub.f32 0.0, %v436_v51 }
 0x246   :  { %1518 = vrcp.f32 %v457_v36  ;;  %v1352_v47 = vpop.f32.mrb[12].mxu1  ;;  %v447_v0 = vmul.f32 0.3275911, %v435_v56  ;;  %v1899_v1 = vmul.f32 0.70710677, %v1891_v57  ;;  %v601_v20 = vmul.f32 %v589_v62, %v433_v25 }
 0x247   :  { %v400_v53 = vpop.f32.mrb[13].mxu1  ;;  %1520 = vrcp.f32 %v456_v49  ;;  %v460_v2 = vadd.f32 1.0, %v448_v60  ;;  %v438_v5 = vand.u32 2147483647, %v1894_v61  ;;  %v1909_v14 = vmul.f32 1.442695, %v599_v59 }
 0x248   :  { %1522 = vrcp.f32 %v455_v54  ;;  %v459_v9 = vadd.f32 1.0, %v447_v0  ;;  %v437_v10 = vand.u32 2147483647, %v1899_v1  ;;  %v591_v22 = vsub.f32 0.0, %v435_v56 }
 0x249   :  { %1524 = vrcp.f32 %v460_v2  ;;  %v450_v15 = vmul.f32 0.3275911, %v438_v5  ;;  %v604_v26 = vmul.f32 %v592_v4, %v436_v51  ;;  %v594_v27 = vsub.f32 0.0, %v438_v5 }
 0x24a   :  { %v1902_v6 = vpop.f32.mrb[14].mxu1  ;;  %1526 = vrcp.f32 %v459_v9  ;;  %v449_v23 = vmul.f32 0.3275911, %v437_v10  ;;  %v1913_v28 = vadd.f32 %v1352_v47, %v243_v17  ;;  %v617_v31 = vmul.f32 1.442695, %v602_v7  ;;  %v238_v47 = vpop.permute.xlu1 %237 }
 0x24b   :  { %v1905_v11 = vpop.f32.mrb[15].mxu1  ;;  %v462_v21 = vadd.f32 1.0, %v450_v15  ;;  %v593_v34 = vsub.f32 0.0, %v437_v10  ;;  %v1919_v25 = vmul.f32 0.5, %v386_v33  ;;  %v615_v41 = vmul.f32 1.442695, %v601_v20 }
 0x24c   :  { %v461_v32 = vadd.f32 1.0, %v449_v23  ;;  %v1922_v36 = vmul.f32 0.70710677, %v1913_v28  ;;  %v603_v43 = vmul.f32 %v591_v22, %v435_v56  ;;  %v621_v49 = vmul.f32 1.442695, %v604_v26 }
 0x24d   :  { %1528 = vrcp.f32 %v462_v21  ;;  %v606_v51 = vmul.f32 %v594_v27, %v438_v5  ;;  %v1929_v33 = vmul.f32 0.5, %v1878_v37  ;;  %v605_v58 = vmul.f32 %v593_v34, %v437_v10 }
 0x24e   :  { %1530 = vrcp.f32 %v461_v32  ;;  %v1925_v54 = vand.u32 2147483647, %v1922_v36  ;;  %v1931_v59 = vadd.f32 %v400_v53, %v238_v47  ;;  %v1937_v62 = vmul.f32 0.5, %v1888_v52  ;;  %v253_v52 = vpop.permute.xlu0 %252 }
 0x24f   :  { %v1911_v24 = vpop.eup %1516  ;;  %1532 = vpow2.f32 %v617_v31  ;;  %v619_v5 = vmul.f32 1.442695, %v603_v43  ;;  %v625_v9 = vmul.f32 1.442695, %v606_v51  ;;  %v623_v22 = vmul.f32 1.442695, %v605_v58 }
 0x250   :  { %v1915_v29 = vpop.eup %1518  ;;  %v482_v30 = vmul.f32 1.0614054, %v1911_v24  ;;  %v452_v0 = vmul.f32 0.3275911, %v1925_v54  ;;  %1534 = vpow2.f32 %v615_v41  ;;  %v1943_v37 = vmul.f32 0.70710677, %v1931_v59 }
 0x251   :  { %v481_v35 = vmul.f32 1.0614054, %v1915_v29  ;;  %v1933_v60 = vpop.eup %1520  ;;  %1536 = vpow2.f32 %v621_v49  ;;  %v1955_v27 = vadd.f32 %v1902_v6, %v253_v52  ;;  %v596_v41 = vsub.f32 0.0, %v1925_v54 }
 0x252   :  { %v494_v40 = vadd.f32 -1.4531521, %v482_v30  ;;  %v1940_v2 = vpop.eup %1522  ;;  %v464_v10 = vadd.f32 1.0, %v452_v0  ;;  %v439_v23 = vand.u32 2147483647, %v1943_v37  ;;  %vm662_vm6 = vcmp.ge.f32.partialorder %v1870_v18, 0.0 }
 0x253   :  { %v493_v48 = vadd.f32 -1.4531521, %v481_v35  ;;  %v1945_v53 = vpop.eup %1524  ;;  %vm661_vm7 = vcmp.ge.f32.partialorder %v1872_v19, 0.0  ;;  %vm664_vm8 = vcmp.ge.f32.partialorder %v1880_v42, 0.0  ;;  %vm663_vm9 = vcmp.ge.f32.partialorder %v1883_v46, 0.0 }
 0x254   :  { %v506_v55 = vmul.f32 %v1911_v24, %v494_v40  ;;  %v1947_v15 = vpop.eup %1526  ;;  %v484_v20 = vmul.f32 1.0614054, %v1945_v53  ;;  %1538 = vrcp.f32 %v464_v10  ;;  %v451_v32 = vmul.f32 0.3275911, %v439_v23 }
 0x255   :  { %v505_v56 = vmul.f32 %v1915_v29, %v493_v48  ;;  %v483_v21 = vmul.f32 1.0614054, %v1947_v15  ;;  %1540 = vpow2.f32 %v619_v5  ;;  %vm666_vm10 = vcmp.ge.f32.partialorder %v1894_v61, 0.0 }
 0x256   :  { %v518_v4 = vadd.f32 1.4214138, %v506_v55  ;;  %v496_v31 = vadd.f32 -1.4531521, %v484_v20  ;;  %1542 = vpow2.f32 %v625_v9  ;;  %v463_v49 = vadd.f32 1.0, %v451_v32 }
 0x257   :  { %v517_v7 = vadd.f32 1.4214138, %v505_v56  ;;  %v1957_v34 = vpop.eup %1528  ;;  %v495_v40 = vadd.f32 -1.4531521, %v483_v21  ;;  %v1969_v56 = vmul.f32 0.70710677, %v1955_v27 }
 0x258   :  { %v530_v17 = vmul.f32 %v1911_v24, %v518_v4  ;;  %v1960_v43 = vpop.eup %1530  ;;  %v508_v48 = vmul.f32 %v1945_v53, %v496_v31  ;;  %v486_v6 = vmul.f32 1.0614054, %v1957_v34  ;;  %1544 = vrcp.f32 %v463_v49 }
 0x259   :  { %v529_v26 = vmul.f32 %v1915_v29, %v517_v7  ;;  %v507_v55 = vmul.f32 %v1947_v15, %v495_v40  ;;  %v485_v58 = vmul.f32 1.0614054, %v1960_v43  ;;  %v1533_v7 = vpop.eup %1532  ;;  %1546 = vpow2.f32 %v623_v22 }
 0x25a   :  { %v542_v30 = vadd.f32 -0.28449672, %v530_v17  ;;  %v520_v4 = vadd.f32 1.4214138, %v508_v48  ;;  %v498_v5 = vadd.f32 -1.4531521, %v486_v6  ;;  %v1535_v17 = vpop.eup %1534  ;;  %v608_v6 = vmul.f32 %v596_v41, %v1925_v54 }
 0x25b   :  { %v541_v35 = vadd.f32 -0.28449672, %v529_v26  ;;  %v519_v10 = vadd.f32 1.4214138, %v507_v55  ;;  %v497_v52 = vadd.f32 -1.4531521, %v485_v58  ;;  %v1537_v31 = vpop.eup %1536 }
 0x25c   :  { %v554_v47 = vmul.f32 %v1911_v24, %v542_v30  ;;  %v532_v26 = vmul.f32 %v1945_v53, %v520_v4  ;;  %v510_v21 = vmul.f32 %v1957_v34, %v498_v5  ;;  %v595_v30 = vsub.f32 0.0, %v439_v23 }
 0x25d   :  { %v553_v51 = vmul.f32 %v1915_v29, %v541_v35  ;;  %v531_v35 = vmul.f32 %v1947_v15, %v519_v10  ;;  %v509_v40 = vmul.f32 %v1960_v43, %v497_v52  ;;  %vm665_vm11 = vcmp.ge.f32.partialorder %v1899_v1, 0.0 }
 0x25e   :  { %v566_v0 = vadd.f32 0.2548296, %v554_v47  ;;  %v1978_v47 = vand.u32 2147483647, %v1969_v56  ;;  %v544_v22 = vadd.f32 -0.28449672, %v532_v26  ;;  %v1982_v49 = vpop.eup %1538  ;;  %v607_v41 = vmul.f32 %v595_v30, %v439_v23 }
 0x25f   :  { %v565_v9 = vadd.f32 0.2548296, %v553_v51  ;;  %v543_v55 = vadd.f32 -0.28449672, %v531_v35  ;;  %v521_v58 = vadd.f32 1.4214138, %v509_v40 }
 0x260   :  { %v578_v20 = vmul.f32 %v1911_v24, %v566_v0  ;;  %v522_v24 = vadd.f32 1.4214138, %v510_v21  ;;  %v1541_v0 = vpop.eup %1540  ;;  %v556_v5 = vmul.f32 %v1945_v53, %v544_v22  ;;  %vm668_vm12 = vcmp.ge.f32.partialorder %v1922_v36, 0.0 }
 0x261   :  { %v577_v32 = vmul.f32 %v1915_v29, %v565_v9  ;;  %v454_v29 = vmul.f32 0.3275911, %v1978_v47  ;;  %v1543_v10 = vpop.eup %1542  ;;  %v555_v52 = vmul.f32 %v1947_v15, %v543_v55  ;;  %v533_v54 = vmul.f32 %v1960_v43, %v521_v58 }
 0x262   :  { %v638_v48 = vmul.f32 %v1533_v7, %v578_v20  ;;  %v534_v9 = vmul.f32 %v1957_v34, %v522_v24  ;;  %v488_v7 = vmul.f32 1.0614054, %v1982_v49  ;;  %v568_v26 = vadd.f32 0.2548296, %v556_v5  ;;  %v1995_v22 = vpop.eup %1544  ;;  %v248_v24 = vpop.permute.xlu1 %247 }
 0x263   :  { %v637_v51 = vmul.f32 %v1535_v17, %v577_v32  ;;  %v466_v20 = vadd.f32 1.0, %v454_v29  ;;  %v1992_v32 = vmul.f32 0.5, %v1891_v57  ;;  %v567_v40 = vadd.f32 0.2548296, %v555_v52  ;;  %v1547_v58 = vpop.eup %1546 }
 0x264   :  { %v650_v4 = vsub.f32 1.0, %v638_v48  ;;  %v546_v21 = vadd.f32 -0.28449672, %v534_v9  ;;  %v545_v48 = vadd.f32 -0.28449672, %v533_v54  ;;  %v580_v23 = vmul.f32 %v1945_v53, %v568_v26 }
 0x265   :  { %v649_v17 = vsub.f32 1.0, %v637_v51  ;;  %1548 = vrcp.f32 %v466_v20  ;;  %v500_v51 = vadd.f32 -1.4531521, %v488_v7  ;;  %v629_v55 = vmul.f32 1.442695, %v608_v6 }
 0x266   :  { %v674_v35 = vsub.f32 0.0, %v650_v4  ;;  %v558_v30 = vmul.f32 %v1957_v34, %v546_v21  ;;  %v579_v57 = vmul.f32 %v1947_v15, %v567_v40  ;;  %v557_v29 = vmul.f32 %v1960_v43, %v545_v48 }
 0x267   :  { %v627_v5 = vmul.f32 1.442695, %v607_v41  ;;  %v2003_v9 = vadd.f32 %v1905_v11, %v248_v24  ;;  %v673_v52 = vsub.f32 0.0, %v649_v17  ;;  %v640_v54 = vmul.f32 %v1537_v31, %v580_v23 }
 0x268   :  { %v570_v20 = vadd.f32 0.2548296, %v558_v30  ;;  %v512_v53 = vmul.f32 %v1982_v49, %v500_v51  ;;  %v686_v26 = vsel %vm662_vm6, %v650_v4, %v674_v35  ;;  %v639_v21 = vmul.f32 %v1541_v0, %v579_v57  ;;  %vm1471_vm6 = vmpackc.low %vm772_vm3, %vm1608_vm2 }
 0x269   :  { %v569_v6 = vadd.f32 0.2548296, %v557_v29  ;;  %v487_v15 = vmul.f32 1.0614054, %v1995_v22  ;;  %v652_v7 = vsub.f32 1.0, %v640_v54  ;;  %1550 = vpow2.f32 %v629_v55 }
 0x26a   :  { %v582_v41 = vmul.f32 %v1957_v34, %v570_v20  ;;  %v524_v11 = vadd.f32 1.4214138, %v512_v53  ;;  %v651_v31 = vsub.f32 1.0, %v639_v21  ;;  %1552 = vpow2.f32 %v627_v5 }
 0x26b   :  { %v581_v40 = vmul.f32 %v1960_v43, %v569_v6  ;;  %v499_v48 = vadd.f32 -1.4531521, %v487_v15  ;;  %v710_v18 = vadd.f32 1.0, %v686_v26  ;;  %v676_v4 = vsub.f32 0.0, %v652_v7 }
 0x26c   :  { %v642_v0 = vmul.f32 %v1543_v10, %v582_v41  ;;  %v536_v35 = vmul.f32 %v1982_v49, %v524_v11  ;;  %v685_v24 = vsel %vm661_vm7, %v649_v17, %v673_v52  ;;  %v675_v23 = vsub.f32 0.0, %v651_v31 }
 0x26d   :  { %v641_v30 = vmul.f32 %v1547_v58, %v581_v40  ;;  %v511_v34 = vmul.f32 %v1995_v22, %v499_v48  ;;  %v688_v51 = vsel %vm664_vm8, %v652_v7, %v676_v4  ;;  %v598_v43 = vsub.f32 0.0, %v1978_v47 }
 0x26e   :  { %v654_v55 = vsub.f32 1.0, %v642_v0  ;;  %v548_v57 = vadd.f32 -0.28449672, %v536_v35  ;;  %v687_v10 = vsel %vm663_vm9, %v651_v31, %v675_v23  ;;  %v2025_v19 = vmul.f32 0.70710677, %v2003_v9 }
 0x26f   :  { %v2020_v29 = vpop.eup %1548  ;;  %v653_v5 = vsub.f32 1.0, %v641_v30  ;;  %v523_v54 = vadd.f32 1.4214138, %v511_v34  ;;  %v709_v17 = vadd.f32 1.0, %v685_v24  ;;  %v722_v20 = vmul.f32 %v710_v18, %v1885_v50 }
 0x270   :  { %v678_v58 = vsub.f32 0.0, %v654_v55  ;;  %v560_v52 = vmul.f32 %v1982_v49, %v548_v57  ;;  %v490_v42 = vmul.f32 1.0614054, %v2020_v29  ;;  %v712_v53 = vadd.f32 1.0, %v688_v51 }
 0x271   :  { %v677_v26 = vsub.f32 0.0, %v653_v5  ;;  %v535_v21 = vmul.f32 %v1995_v22, %v523_v54  ;;  %v711_v6 = vadd.f32 1.0, %v687_v10  ;;  %v441_v40 = vand.u32 2147483647, %v2025_v19 }
 0x272   :  { %v690_v46 = vsel %vm666_vm10, %v654_v55, %v678_v58  ;;  %v572_v15 = vadd.f32 0.2548296, %v560_v52  ;;  %v502_v7 = vadd.f32 -1.4531521, %v490_v42  ;;  %v721_v50 = vmul.f32 %v709_v17, %v1896_v63 }
 0x273   :  { %v714_v41 = vadd.f32 1.0, %v690_v46  ;;  %v689_v11 = vsel %vm665_vm11, %v653_v5, %v677_v26  ;;  %v547_v31 = vadd.f32 -0.28449672, %v535_v21  ;;  %v1551_v48 = vpop.eup %1550  ;;  %v724_v61 = vmul.f32 %v712_v53, %v1919_v25 }
 0x274   :  { %v713_v18 = vadd.f32 1.0, %v689_v11  ;;  %v584_v4 = vmul.f32 %v1982_v49, %v572_v15  ;;  %v514_v0 = vmul.f32 %v2020_v29, %v502_v7  ;;  %v1553_v35 = vpop.eup %1552  ;;  %v610_v23 = vmul.f32 %v598_v43, %v1978_v47 }
 0x275   :  { %v559_v24 = vmul.f32 %v1995_v22, %v547_v31  ;;  %v453_v1 = vmul.f32 0.3275911, %v441_v40  ;;  %v723_v30 = vmul.f32 %v711_v6, %v1929_v33  ;;  %v726_v34 = vmul.f32 %v714_v41, %v1937_v62 }
 0x276   :  { %v644_v51 = vmul.f32 %v1551_v48, %v584_v4  ;;  %v526_v55 = vadd.f32 1.4214138, %v514_v0  ;;  %v725_v63 = vmul.f32 %v713_v18, %v1992_v32  ;;  %v479_v10 = vmul.f32 1.0614054, %v1940_v2 }
 0x277   :  { %v571_v57 = vadd.f32 0.2548296, %v559_v24  ;;  %v465_v49 = vadd.f32 1.0, %v453_v1  ;;  %v480_v54 = vmul.f32 1.0614054, %v1933_v60  ;;  %v2048_v17 = vpack.c.bf16 %v722_v20, %v721_v50 }
 0x278   :  { %v656_v5 = vsub.f32 1.0, %v644_v51  ;;  %v538_v25 = vmul.f32 %v2020_v29, %v526_v55  ;;  %v491_v62 = vadd.f32 -1.4531521, %v479_v10  ;;  %v2052_v58 = vpack.c.bf16 %v724_v61, %v723_v30 }
 0x279   :  { %v583_v33 = vmul.f32 %v1995_v22, %v571_v57  ;;  %1554 = vrcp.f32 %v465_v49  ;;  %v492_v32 = vadd.f32 -1.4531521, %v480_v54  ;;  %v633_v42 = vmul.f32 1.442695, %v610_v23 }
 0x27a   :  { %v680_v47 = vsub.f32 0.0, %v656_v5  ;;  %v550_v43 = vadd.f32 -0.28449672, %v538_v25  ;;  %v503_v53 = vmul.f32 %v1940_v2, %v491_v62  ;;  %v2055_v26 = vpack.c.bf16 %v726_v34, %v725_v63 }
 0x27b   :  { %v643_v52 = vmul.f32 %v1553_v35, %v583_v33  ;;  %v504_v20 = vmul.f32 %v1933_v60, %v492_v32  ;;  %1556 = vpow2.f32 %v1907_v12  ;;  %v597_v41 = vsub.f32 0.0, %v441_v40 }
 0x27c   :  { %v692_v21 = vsel %vm668_vm12, %v656_v5, %v680_v47  ;;  %v515_v22 = vadd.f32 1.4214138, %v503_v53  ;;  %1558 = vpow2.f32 %v1909_v14  ;;  %v562_v46 = vmul.f32 %v2020_v29, %v550_v43 }
 0x27d   :  { %v655_v36 = vsub.f32 1.0, %v643_v52  ;;  %v716_v6 = vadd.f32 1.0, %v692_v21  ;;  %v516_v15 = vadd.f32 1.4214138, %v504_v20  ;;  %1560 = vpow2.f32 %v633_v42 }
 0x27e   :  { %v527_v11 = vmul.f32 %v1940_v2, %v515_v22  ;;  %v704_v31 = vmul.f32 0.5, %v1913_v28  ;;  %vm667_vm13 = vcmp.ge.f32.partialorder %v1943_v37, 0.0  ;;  %v703_v50 = vmul.f32 0.5, %v1931_v59 }
 0x27f   :  { %v679_v7 = vsub.f32 0.0, %v655_v36  ;;  %v528_v48 = vmul.f32 %v1933_v60, %v516_v15  ;;  %v574_v0 = vadd.f32 0.2548296, %v562_v46  ;;  %v609_v24 = vmul.f32 %v597_v41, %v441_v40 }
 0x280   :  { %v539_v18 = vadd.f32 -0.28449672, %v527_v11  ;;  %v728_v14 = vmul.f32 %v716_v6, %v704_v31  ;;  %v696_v6 = vmul.f32 0.5, %v1854_v3  ;;  %vm670_vm0 = vcmp.ge.f32.partialorder %v1969_v56, 0.0 }
 0x281   :  { %v691_v12 = vsel %vm667_vm13, %v655_v36, %v679_v7  ;;  %v540_v35 = vadd.f32 -0.28449672, %v528_v48  ;;  %v586_v37 = vmul.f32 %v2020_v29, %v574_v0  ;;  %v631_v57 = vmul.f32 1.442695, %v609_v24  ;;  %v747_v24 = vpop.permute.xlu0 %746 }
 0x282   :  { %v715_v4 = vadd.f32 1.0, %v691_v12  ;;  %v551_v23 = vmul.f32 %v1940_v2, %v539_v18  ;;  %v706_v3 = vmul.f32 0.5, %v1955_v27  ;;  %vm669_vm1 = vcmp.ge.f32.partialorder %v2025_v19, 0.0  ;;  %v732_v27 = vld [vmem:[%s2209_s4 + $0x8] sm:$0xff]  ;;  %v734_v19 = vld [vmem:[%s2209_s4 + $0x18] sm:$0x3f] }
 0x283   :  { %v1555_v61 = vpop.eup %1554  ;;  %v552_v28 = vmul.f32 %v1933_v60, %v540_v35  ;;  %1562 = vpow2.f32 %v631_v57  ;;  %v705_v56 = vmul.f32 0.5, %v2003_v9  ;;  %v733_v9 = vld [vmem:[%s2209_s4 + $0x10] sm:$0xff]  ;;  %vm880_vm2 = vcmask 523264  }
 0x284   :  { %v727_v1 = vmul.f32 %v715_v4, %v703_v50  ;;  %v489_v30 = vmul.f32 1.0614054, %v1555_v61  ;;  %v563_v34 = vadd.f32 0.2548296, %v551_v23  ;;  %v742_v23 = vpop.permute.xlu1 %741  ;;  %vm1201_vm10 = vcmask 259072  }
 0x285   :  { %v564_v55 = vadd.f32 0.2548296, %v552_v28  ;;  %v1557_v59 = vpop.eup %1556 }
 0x286   :  { %v501_v51 = vadd.f32 -1.4531521, %v489_v30  ;;  %v1466_v63 = vpack.c.bf16 %v728_v14, %v727_v1  ;;  %v575_v49 = vmul.f32 %v1940_v2, %v563_v34  ;;  %v1559_v10 = vpop.eup %1558 }
 0x287   :  { %v576_v40 = vmul.f32 %v1933_v60, %v564_v55  ;;  %v1561_v25 = vpop.eup %1560  ;;  %v695_v60 = vmul.f32 0.5, %v1862_v8 }
 0x288   :  { %v513_v5 = vmul.f32 %v1555_v61, %v501_v51  ;;  %v635_v54 = vmul.f32 %v1559_v10, %v575_v49  ;;  %v646_v33 = vmul.f32 %v1561_v25, %v586_v37  ;;  %v757_v37 = vpop.permute.xlu0 %756 }
 0x289   :  { %v636_v47 = vmul.f32 %v1557_v59, %v576_v40 }
 0x28a   :  { %v525_v62 = vadd.f32 1.4214138, %v513_v5  ;;  %v647_v43 = vsub.f32 1.0, %v635_v54  ;;  %v658_v42 = vsub.f32 1.0, %v646_v33  ;;  %v1086_v33 = vld [vmem:[%s2213_s8 + $0x20] sm:$0xff] }
 0x28b   :  { %v648_v29 = vsub.f32 1.0, %v636_v47 }
 0x28c   :  { %v537_v32 = vmul.f32 %v1555_v61, %v525_v62  ;;  %v671_v52 = vsub.f32 0.0, %v647_v43  ;;  %v682_v15 = vsub.f32 0.0, %v658_v42  ;;  %v1087_v62 = vld [vmem:[%s2213_s8 + $0x28] sm:$0xff] }
 0x28d   :  { %v672_v21 = vsub.f32 0.0, %v648_v29  ;;  %v1563_v16 = vpop.eup %1562  ;;  %v1500_v47 = vpack.c.bf16 %v1087_v62, %v1086_v33 }
 0x28e   :  { %v549_v53 = vadd.f32 -0.28449672, %v537_v32  ;;  %v683_v2 = vsel %vm659_vm14, %v647_v43, %v671_v52  ;;  %v694_v12 = vsel %vm670_vm0, %v658_v42, %v682_v15  ;;  %v1088_v43 = vld [vmem:[%s2213_s8 + $0x30] sm:$0xff]  ;;  %v1089_v32 = vld [vmem:[%s2213_s8 + $0x38] sm:$0xff]  ;;  %v1242_v52 = vld [vmem:[%s2212_s7] ss:$0 sm:$0xff] }
 0x28f   :  { %v684_v36 = vsel %vm660_vm15, %v648_v29, %v672_v21  ;;  %v707_v22 = vadd.f32 1.0, %v683_v2  ;;  %v718_v8 = vadd.f32 1.0, %v694_v12  ;;  %v1504_v29 = vpack.c.bf16 %v1089_v32, %v1088_v43 }
 0x290   :  { %v561_v20 = vmul.f32 %v1555_v61, %v549_v53  ;;  %v708_v46 = vadd.f32 1.0, %v684_v36 }
 0x291   :  { %v719_v41 = vmul.f32 %v707_v22, %v695_v60  ;;  %v730_v4 = vmul.f32 %v718_v8, %v706_v3 }
 0x292   :  { %v573_v7 = vadd.f32 0.2548296, %v561_v20  ;;  %v720_v11 = vmul.f32 %v708_v46, %v696_v6 }
 0x294   :  { %v585_v31 = vmul.f32 %v1555_v61, %v573_v7  ;;  %v1450_v48 = vpack.c.bf16 %v720_v11, %v719_v41 }
 0x296   :  { %v645_v13 = vmul.f32 %v1563_v16, %v585_v31  ;;  %1451 = vmatprep.subr.bf16.mxu0 %v1450_v48 }
 0x297   :  { %1453 = vmatpush3.bf16.msra.mxu0 %v1450_v48 }
 0x298   :  { %v657_v50 = vsub.f32 1.0, %v645_v13  ;;  %1455 = vmatprep.subr.bf16.mxu0 %v2048_v17 }
 0x29a   :  { %v681_v18 = vsub.f32 0.0, %v657_v50 }
 0x29b   :  { %1457 = vmatpush3.bf16.msra.mxu0 %v2048_v17  ;;  %v871_v17 = vld [vmem:[%s2211_s6 + $0x30] sm:$0xff] }
 0x29c   :  { %v693_v14 = vsel %vm669_vm1, %v657_v50, %v681_v18  ;;  %1459 = vmatprep.subr.bf16.mxu0 %v2052_v58 }
 0x29d   :  { %v717_v0 = vadd.f32 1.0, %v693_v14 }
 0x29f   :  { %v729_v35 = vmul.f32 %v717_v0, %v705_v56  ;;  %1461 = vmatpush3.bf16.msra.mxu0 %v2052_v58  ;;  %v872_v58 = vld [vmem:[%s2211_s6 + $0x38] sm:$0xff] }
 0x2a0   :  { %1463 = vmatprep.subr.bf16.mxu0 %v2055_v26 }
 0x2a1   :  { %v1470_v61 = vpack.c.bf16 %v730_v4, %v729_v35 }
 0x2a3   :  { %1465 = vmatpush3.bf16.msra.mxu0 %v2055_v26  ;;  %v1488_v26 = vpack.c.bf16 %v872_v58, %v871_v17 }
 0x2a4   :  { %1467 = vmatprep.subr.bf16.mxu0 %v1466_v63 }
 0x2a5   :  { %1489 = vmatprep.subr.bf16.mxu1 %v1488_v26 }
 0x2a6   :  { %1491 = vmatpush3.bf16.msra.mxu1 %v1488_v26 }
 0x2a7   :  { %1469 = vmatpush3.bf16.msra.mxu0 %v1466_v63  ;;  %v752_v63 = vpop.permute.xlu1 %751 }
 0x2a8   :  { %1472 = vmatprep.subr.msk.bf16.mxu0 %vm1471_vm6, %v1470_v61 }
 0x2ab   :  { %1475 = vmatpush3.bf16.msk.msra.mxu0 %vm1471_vm6, %v1470_v61 }
 0x2ae   :  { %1381 = vmatmul.mubr.msk.f32.vlgmr.msra.gmra.mrb[0].mxu0 %vm759_vm5, %v732_v27 }
 0x2af   :  { %1383 = vmatprep.mubr.msk.f32.mxu0 %vm759_vm5, %v733_v9 }
 0x2b2   :  { %1384 = vmatmul.mubr.msk.f32.gmra.mrb[2].mxu0 %vm759_vm5, %v734_v19 }
 0x381   :  { %v1382_v1 = vpop.f32.mrb[0].mxu0 }
 0x382   :  { %v848_v30 = vadd.f32 %v1382_v1, %v747_v24  ;;  %v842_v28 = vpop.f32.mrb[1].mxu0 }
 0x383   :  { %v843_v34 = vadd.f32 %v842_v28, %v742_v23 }
 0x384   :  { %v862_v59 = vadd.f32 %v848_v30, %v1776_v39  ;;  %v1083_v39 = vld [vmem:[%s2213_s8 + $0x8] sm:$0xff] }
 0x385   :  { %v861_v51 = vadd.f32 %v843_v34, %v1773_v38  ;;  %v1385_v55 = vpop.f32.mrb[2].mxu0  ;;  %v1082_v38 = vld [vmem:[%s2213_s8] sm:$0xff] }
 0x386   :  { %v858_v57 = vadd.f32 %v1385_v55, %v757_v37  ;;  %v852_v49 = vpop.f32.mrb[3].mxu0  ;;  %v1492_v25 = vpack.c.bf16 %v1083_v39, %v1082_v38 }
 0x387   :  { %v853_v10 = vadd.f32 %v852_v49, %v752_v63  ;;  %1402 = vmatprep.mubr.msk.f32.mxu1 %vm880_vm2, %v861_v51 }
 0x388   :  { %1403 = vmatmul.mubr.msk.f32.vlgmr.msra.gmra.mrb[16].mxu1 %vm880_vm2, %v862_v59  ;;  %v864_v40 = vadd.f32 %v858_v57, %v1786_v45  ;;  %1493 = vmatprep.subr.bf16.mxu0 %v1492_v25  ;;  %v1085_v45 = vld [vmem:[%s2213_s8 + $0x18] sm:$0xff] }
 0x389   :  { %v863_v5 = vadd.f32 %v853_v10, %v1783_v44  ;;  %1495 = vmatpush3.bf16.msra.mxu0 %v1492_v25  ;;  %v1084_v44 = vld [vmem:[%s2213_s8 + $0x10] sm:$0xff] }
 0x38a   :  { %v1496_v54 = vpack.c.bf16 %v1085_v45, %v1084_v44 }
 0x38b   :  { %1405 = vmatprep.mubr.msk.f32.mxu1 %vm880_vm2, %v863_v5 }
 0x38c   :  { %1406 = vmatmul.mubr.msk.f32.gmra.mrb[18].mxu1 %vm880_vm2, %v864_v40  ;;  %1497 = vmatprep.subr.bf16.mxu0 %v1496_v54 }
 0x38d   :  { %1499 = vmatpush3.bf16.msra.mxu0 %v1496_v54 }
 0x38e   :  { %1501 = vmatprep.subr.bf16.mxu0 %v1500_v47 }
 0x391   :  { %1503 = vmatpush3.bf16.msra.mxu0 %v1500_v47 }
 0x392   :  { %1505 = vmatprep.subr.bf16.mxu0 %v1504_v29 }
 0x395   :  { %1507 = vmatpush3.bf16.msra.mxu0 %v1504_v29 }
 0x45b   :  { %v1404_v42 = vpop.f32.mrb[16].mxu1 }
 0x45c   :  { %v2139_v53 = vadd.f32 %v1404_v42, %v1242_v52  ;;  %v959_v21 = vpop.f32.mrb[17].mxu1 }
 0x45d   :  { %v2141_v2 = vadd.f32 %v1242_v52, %v959_v21 }
 0x45e   :  { %v2144_v60 = vmul.f32 0.70710677, %v2139_v53 }
 0x45f   :  { %v2147_v20 = vmul.f32 0.70710677, %v2141_v2  ;;  %v1407_v36 = vpop.f32.mrb[18].mxu1 }
 0x460   :  { %v983_v22 = vand.u32 2147483647, %v2144_v60  ;;  %v2150_v6 = vadd.f32 %v1407_v36, %v1242_v52  ;;  %v969_v46 = vpop.f32.mrb[19].mxu1  ;;  %vm1059_vm5 = vcmp.ge.f32.partialorder %v2144_v60, 0.0 }
 0x461   :  { %v982_v15 = vand.u32 2147483647, %v2147_v20  ;;  %v2153_v7 = vadd.f32 %v1242_v52, %v969_v46  ;;  %vm1058_vm7 = vcmp.ge.f32.partialorder %v2147_v20, 0.0 }
 0x462   :  { %v987_v41 = vmul.f32 0.3275911, %v983_v22  ;;  %v2156_v11 = vmul.f32 0.70710677, %v2150_v6  ;;  %v1035_v4 = vsub.f32 0.0, %v983_v22 }
 0x463   :  { %v986_v31 = vmul.f32 0.3275911, %v982_v15  ;;  %v2159_v16 = vmul.f32 0.70710677, %v2153_v7  ;;  %v1034_v56 = vsub.f32 0.0, %v982_v15 }
 0x464   :  { %v991_v48 = vadd.f32 1.0, %v987_v41  ;;  %v985_v12 = vand.u32 2147483647, %v2156_v11  ;;  %v1039_v35 = vmul.f32 %v1035_v4, %v983_v22  ;;  %vm1061_vm8 = vcmp.ge.f32.partialorder %v2156_v11, 0.0  ;;  %v1247_v11 = vld [vmem:[%s2214_s9] ss:$0 sm:$0xff] }
 0x465   :  { %v990_v13 = vadd.f32 1.0, %v986_v31  ;;  %v984_v50 = vand.u32 2147483647, %v2159_v16  ;;  %v1038_v19 = vmul.f32 %v1034_v56, %v982_v15  ;;  %vm1060_vm9 = vcmp.ge.f32.partialorder %v2159_v16, 0.0  ;;  %s1611_s9 = smov [#allocation2]  }
 0x466   :  { %1564 = vrcp.f32 %v991_v48  ;;  %v989_v8 = vmul.f32 0.3275911, %v985_v12  ;;  %v1037_v61 = vsub.f32 0.0, %v985_v12  ;;  %v1044_v23 = vmul.f32 1.442695, %v1039_v35  ;;  %s1208_s17 = sshll.u32 %s1611_s9, 4  ;;  %s1209_s17 = int_to_ptr.vmem [resolvable:$true] %s1208_s17 }
 0x467   :  { %1566 = vrcp.f32 %v990_v13  ;;  %v988_v18 = vmul.f32 0.3275911, %v984_v50  ;;  %v1036_v17 = vsub.f32 0.0, %v984_v50  ;;  %v1042_v37 = vmul.f32 1.442695, %v1038_v19  ;;  %s1584_s6 = scalar_lea.vmem %s1209_s17, 512  ;;  %p1589_p1 = scmp.lt.s32.totalorder %s1209_s17, %s1209_s17 }
 0x468   :  { %v993_v3 = vadd.f32 1.0, %v989_v8  ;;  %v1041_v30 = vmul.f32 %v1037_v61, %v985_v12  ;;  %p1585_p0 = scmp.ne.s32.totalorder %s1209_s17, %s1584_s6  ;;  %p1590_p2 = scmp.lt.s32.totalorder %s1584_s6, %s1584_s6 }
 0x469   :  { %v992_v14 = vadd.f32 1.0, %v988_v18  ;;  %v1040_v55 = vmul.f32 %v1036_v17, %v984_v50 }
 0x46a   :  { %1568 = vrcp.f32 %v993_v3  ;;  %v1048_v5 = vmul.f32 1.442695, %v1041_v30  ;;  %v1070_v30 = vmul.f32 0.5, %v2141_v2  ;;  %v1073_v2 = vmul.f32 0.5, %v2150_v6  ;;  %v1580_v6 = vld [vmem:[%s2205_s0 + $0x8] sm:$0xff]  ;;  %p1591_p3 = por %p1590_p2, %p1589_p1 }
 0x46b   :  { %1570 = vrcp.f32 %v992_v14  ;;  %v1046_v25 = vmul.f32 1.442695, %v1040_v55 }
 0x46c   :  { %1572 = vpow2.f32 %v1044_v23  ;;  %p1592_p4 = pnand %p1591_p3, %p1585_p0 }
 0x46d   :  { %1574 = vpow2.f32 %v1042_v37 }
 0x46e   :  { %1576 = vpow2.f32 %v1048_v5 }
 0x46f   :  { %1578 = vpow2.f32 %v1046_v25 }
 0x470   :  { %v1565_v0 = vpop.eup %1564 }
 0x471   :  { %v1567_v27 = vpop.eup %1566  ;;  %v999_v9 = vmul.f32 1.0614054, %v1565_v0 }
 0x472   :  { %v998_v58 = vmul.f32 1.0614054, %v1567_v27 }
 0x473   :  { %v1003_v26 = vadd.f32 -1.4531521, %v999_v9 }
 0x474   :  { %v1569_v24 = vpop.eup %1568  ;;  %v1002_v1 = vadd.f32 -1.4531521, %v998_v58 }
 0x475   :  { %v1571_v28 = vpop.eup %1570  ;;  %v1007_v34 = vmul.f32 %v1565_v0, %v1003_v26  ;;  %v1001_v51 = vmul.f32 1.0614054, %v1569_v24 }
 0x476   :  { %v1006_v63 = vmul.f32 %v1567_v27, %v1002_v1  ;;  %v1000_v59 = vmul.f32 1.0614054, %v1571_v28  ;;  %v1573_v41 = vpop.eup %1572 }
 0x477   :  { %v1011_v57 = vadd.f32 1.4214138, %v1007_v34  ;;  %v1005_v49 = vadd.f32 -1.4531521, %v1001_v51  ;;  %v1575_v12 = vpop.eup %1574 }
 0x478   :  { %v1010_v10 = vadd.f32 1.4214138, %v1006_v63  ;;  %v1004_v40 = vadd.f32 -1.4531521, %v1000_v59  ;;  %v1577_v4 = vpop.eup %1576  ;;  %v1072_v59 = vmul.f32 0.5, %v2153_v7 }
 0x479   :  { %v1015_v38 = vmul.f32 %v1565_v0, %v1011_v57  ;;  %v1009_v39 = vmul.f32 %v1569_v24, %v1005_v49  ;;  %v1579_v61 = vpop.eup %1578 }
 0x47a   :  { %v1014_v44 = vmul.f32 %v1567_v27, %v1010_v10  ;;  %v1008_v45 = vmul.f32 %v1571_v28, %v1004_v40 }
 0x47b   :  { %v1019_v54 = vadd.f32 -0.28449672, %v1015_v38  ;;  %v1013_v33 = vadd.f32 1.4214138, %v1009_v39  ;;  %v1581_v38 = vld [vmem:[%s2205_s0] sm:$0xff] }
 0x47c   :  { %v1018_v62 = vadd.f32 -0.28449672, %v1014_v44  ;;  %v1012_v47 = vadd.f32 1.4214138, %v1008_v45 }
 0x47d   :  { %v1023_v43 = vmul.f32 %v1565_v0, %v1019_v54  ;;  %v1017_v32 = vmul.f32 %v1569_v24, %v1013_v33  ;;  %v1582_v33 = vld [vmem:[%s2205_s0 + $0x18] sm:$0x3f] }
 0x47e   :  { %v1022_v29 = vmul.f32 %v1567_v27, %v1018_v62  ;;  %v1016_v52 = vmul.f32 %v1571_v28, %v1012_v47  ;;  %v1583_v47 = vld [vmem:[%s2205_s0 + $0x10] sm:$0xff] }
 0x47f   :  { %v1027_v42 = vadd.f32 0.2548296, %v1023_v43  ;;  %v1021_v21 = vadd.f32 -0.28449672, %v1017_v32 }
 0x480   :  { %v1026_v36 = vadd.f32 0.2548296, %v1022_v29  ;;  %v1020_v22 = vadd.f32 -0.28449672, %v1016_v52 }
 0x481   :  { %v1031_v46 = vmul.f32 %v1565_v0, %v1027_v42  ;;  %v1025_v15 = vmul.f32 %v1569_v24, %v1021_v21 }
 0x482   :  { %v1030_v31 = vmul.f32 %v1567_v27, %v1026_v36  ;;  %v1024_v48 = vmul.f32 %v1571_v28, %v1020_v22 }
 0x483   :  { %v1051_v13 = vmul.f32 %v1573_v41, %v1031_v46  ;;  %v1029_v50 = vadd.f32 0.2548296, %v1025_v15 }
 0x484   :  { %v1050_v8 = vmul.f32 %v1575_v12, %v1030_v31  ;;  %v1028_v18 = vadd.f32 0.2548296, %v1024_v48 }
 0x485   :  { %v1055_v3 = vsub.f32 1.0, %v1051_v13  ;;  %v1033_v14 = vmul.f32 %v1569_v24, %v1029_v50 }
 0x486   :  { %v1054_v56 = vsub.f32 1.0, %v1050_v8  ;;  %v1032_v35 = vmul.f32 %v1571_v28, %v1028_v18  ;;  %v1071_v28 = vmul.f32 0.5, %v2139_v53 }
 0x487   :  { %v1063_v9 = vsub.f32 0.0, %v1055_v3  ;;  %v1053_v19 = vmul.f32 %v1577_v4, %v1033_v14 }
 0x488   :  { %v1062_v0 = vsub.f32 0.0, %v1054_v56  ;;  %v1052_v17 = vmul.f32 %v1579_v61, %v1032_v35 }
 0x489   :  { %v1067_v58 = vsel %vm1059_vm5, %v1055_v3, %v1063_v9  ;;  %v1057_v27 = vsub.f32 1.0, %v1053_v19 }
 0x48a   :  { %v1075_v26 = vadd.f32 1.0, %v1067_v58  ;;  %v1066_v23 = vsel %vm1058_vm7, %v1054_v56, %v1062_v0  ;;  %v1056_v1 = vsub.f32 1.0, %v1052_v17 }
 0x48b   :  { %v1074_v24 = vadd.f32 1.0, %v1066_v23  ;;  %v1065_v34 = vsub.f32 0.0, %v1057_v27 }
 0x48c   :  { %v1064_v37 = vsub.f32 0.0, %v1056_v1  ;;  %v1079_v55 = vmul.f32 %v1075_v26, %v1071_v28 }
 0x48d   :  { %v1078_v51 = vmul.f32 %v1074_v24, %v1070_v30  ;;  %v1069_v60 = vsel %vm1061_vm8, %v1057_v27, %v1065_v34 }
 0x48e   :  { %v1077_v63 = vadd.f32 1.0, %v1069_v60  ;;  %v1068_v20 = vsel %vm1060_vm9, %v1056_v1, %v1064_v37 }
 0x48f   :  { %v1076_v57 = vadd.f32 1.0, %v1068_v20  ;;  %1424 = vmatprep.mubr.msk.f32.mxu0 %vm880_vm2, %v1078_v51 }
 0x490   :  { %1425 = vmatmul.mubr.msk.f32.vlgmr.msra.gmra.mrb[4].mxu0 %vm880_vm2, %v1079_v55  ;;  %v1081_v49 = vmul.f32 %v1077_v63, %v1073_v2 }
 0x491   :  { %v1080_v53 = vmul.f32 %v1076_v57, %v1072_v59 }
 0x493   :  { %1427 = vmatprep.mubr.msk.f32.mxu0 %vm880_vm2, %v1080_v53 }
 0x494   :  { %1428 = vmatmul.mubr.msk.f32.gmra.mrb[6].mxu0 %vm880_vm2, %v1081_v49 }
 0x563   :  { %v1426_v16 = vpop.f32.mrb[4].mxu0 }
 0x564   :  { %v1181_v10 = vadd.f32 %v1426_v16, %v1247_v11  ;;  %v1175_v7 = vpop.f32.mrb[5].mxu0 }
 0x565   :  { %v1176_v5 = vadd.f32 %v1247_v11, %v1175_v7 }
 0x566   :  { %v1195_v40 = vadd.f32 %v1580_v6, %v1181_v10 }
 0x567   :  { %v1194_v39 = vadd.f32 %v1581_v38, %v1176_v5  ;;  %v1429_v25 = vpop.f32.mrb[6].mxu0 }
 0x568   :  { %1199 = vst.msk [vmem:[#allocation2 + $0x8] sm:$0xff] %vm166_vm4, %v1195_v40  ;;  %v1191_v44 = vadd.f32 %v1429_v25, %v1247_v11  ;;  %v1185_v45 = vpop.f32.mrb[7].mxu0 }
 0x569   :  { %1198 = vst.msk [vmem:[#allocation2] sm:$0xff] %vm166_vm4, %v1194_v39  ;;  %v1186_v54 = vadd.f32 %v1247_v11, %v1185_v45 }
 0x56a   :  { %v1197_v62 = vadd.f32 %v1582_v33, %v1191_v44 }
 0x56b   :  { %v1196_v43 = vadd.f32 %v1583_v47, %v1186_v54 }
 0x56c   :  { %1202 = vst.msk [vmem:[#allocation2 + $0x18] sm:$0x3f] %vm1201_vm10, %v1197_v62 }
 0x56d   :  { %1200 = vst.msk [vmem:[#allocation2 + $0x10] sm:$0xff] %vm166_vm4, %v1196_v43 }
 0x56e   :  { %1595 = shalt.err (!%p1592_p4)
}
 0x56f   :  { %s1596_s5 = scalar_lea.hbm %s2215_s10, 512 }
 0x570   :  { %p1597_p5 = scmp.ne.s32.totalorder %s2215_s10, %s1596_s5  ;;  %p1600_p6 = scmp.lt.u32.totalorder %s1596_s5, %s2215_s10 }
 0x572   :  { %p1602_p7 = pnand %p1600_p6, %p1597_p5 }
 0x574   :  { %1605 = shalt.err (!%p1602_p7)
}
 0x575   :  { %s1612_s2 = smov 128   ;;  %s1613_s25 = smov 8  }
 0x576   :  { %1214 = dma.vmem_to_hbm [thread:$0]  %s1209_s17, 512, %s2215_s10, [#allocation3], %s1612_s2, %s1612_s2, %s1613_s25  }
 0x577   :  { %1606 = dma.done.wait [#allocation3], 512  }
 0x578   :  { %1607 = vsyncadd [#allocation3], 4294966784 }
 0x579   :  { %1218 = vsyncpa [#allocation3], 1 }

</bundles_post_ra>
